<compile_context>
chip_gen: v7x
topology: tpu7x:2x2x1
jax: 0.10.0
libtpu: 0.0.40
codegen_flags: <defaults>
</compile_context>

<pallas_src>
import jax
import jax.numpy as jnp
import numpy as np
from jax.experimental import pallas as pl
from jax.experimental.pallas import tpu as pltpu


def _round_up(x, m):
    return (x + m - 1) // m * m


def mad_pallas(date, cat, params, *, tb=512, core_parallel=False,
               vmem_limit_bytes=None):
    """date (B, F) f32, cat (B, N, F+C) f32 = [train_dates[refs] | mem[refs]].

    Returns (B, C) float32 logits.
    Tuning notes (from review): tb=512 is fine on v5e/v6e post-reorder; on v6e
    you may also raise vmem_limit_bytes; on v7x keep tb<=512 (64 MiB VMEM) and
    set core_parallel=True with an even grid length >= 2 to use both TCs.
    """
    pos_w, pos_b, field_w, field_b, adapt_w, adapt_b = params
    del pos_b  # the pos bias cancels exactly in diff = pos(date) - pos(refs)

    B, F = date.shape
    N = cat.shape[1]
    H = pos_w.shape[1]
    C = adapt_w.shape[0]
    HC = H * C
    C_pad = _round_up(C, 128)            # lane-dense output slab width

    # ---- wrapper-side (XLA) weight prep: fuse, reorder c-major, pad, cast ----
    # field columns reordered c-major so the in-kernel grad term is a pure lane
    # tile (no lane-axis split): field_cm[:, c*H + h] = field_w[:, h*C + c].
    field_w_cm = field_w.reshape(F, H, C).transpose(0, 2, 1).reshape(F, HC)
    field_b_cm = field_b.reshape(1, H, C).transpose(0, 2, 1).reshape(1, HC)
    # One fused RHS for the shared-LHS `date` matmul: [field (c-major) | pos].
    dfw = jnp.concatenate([field_w_cm, pos_w], axis=1).astype(jnp.bfloat16)
    dfb = field_b_cm.astype(jnp.float32)                         # (1, HC)
    # pos over the concatenated neighbor rows: zero rows for the mem columns,
    # so the kernel never lane-slices the (TB*N, F+C) tile.
    pos_ext = jnp.concatenate(
        [pos_w, jnp.zeros((C, H), pos_w.dtype)], axis=0).astype(jnp.bfloat16)
    # adapt over the dist-weighted concatenated row: zero rows for the date
    # features, columns padded to C_pad so the output store is lane-dense.
    adapt_ext = jnp.zeros((F + C, C_pad), jnp.float32
                          ).at[F:, :C].set(adapt_w).astype(jnp.bfloat16)
    adapt_bp = jnp.zeros((1, C_pad), jnp.float32).at[:, :C].set(adapt_b)
    # Segment-sum matrix (exact 0/1 in bf16): sums each H-wide lane group of a
    # c-major (TB, HC) row into class c; padded columns >= C are all-zero.
    seg = (jnp.arange(HC, dtype=jnp.int32)[:, None] // H
           == jnp.arange(C_pad, dtype=jnp.int32)[None, :]).astype(jnp.bfloat16)

    # ---- batch tiling (sublane multiple of 8); pad B if necessary -----------
    TB = tb if B >= tb else _round_up(B, 8)
    B_pad = _round_up(B, TB)
    if B_pad != B:
        pad = B_pad - B
        date = jnp.pad(date, ((0, pad), (0, 0)))
        cat = jnp.pad(cat, ((0, pad), (0, 0), (0, 0)))

    date_bf = date.astype(jnp.bfloat16)                          # (B_pad, F)
    cat_bf = cat.reshape(B_pad * N, F + C).astype(jnp.bfloat16)  # (B_pad*N, F+C)

    def kernel(date_ref, cat_ref, dfw_ref, dfb_ref, pos_ext_ref,
               adapt_ext_ref, adapt_b_ref, seg_ref, out_ref):
        date_t = date_ref[...]                          # (TB, F)      bf16
        cat_t = cat_ref[...]                            # (TB*N, F+C)  bf16

        # Shared-LHS fused matmul for `date`: [field (c-major) | pos].
        fused = jnp.dot(date_t, dfw_ref[...],
                        preferred_element_type=jnp.float32)        # (TB, HC+H)
        field_cm = fused[:, :HC] + dfb_ref[...]                    # (TB, HC)
        pos_date = fused[:, HC:]                                   # (TB, H)

        # pos of all TB*N neighbor rows (mem columns hit zero weight rows).
        pos_refs = jnp.dot(cat_t, pos_ext_ref[...],
                           preferred_element_type=jnp.float32)     # (TB*N, H)
        diff = pos_date[:, None, :] - pos_refs.reshape(TB, N, H)   # (TB, N, H)

        # dist = softmax(-||diff||_2) over the N neighbors (stable).
        neg_norm = -jnp.sqrt(jnp.sum(diff * diff, axis=-1))        # (TB, N)
        m = jnp.max(neg_norm, axis=-1, keepdims=True)
        e = jnp.exp(neg_norm - m)
        inv = pl.reciprocal(jnp.sum(e, axis=-1, keepdims=True), approx=True)
        dist = (e * inv)[:, :, None]                               # (TB, N, 1)

        # Hoisted N-reduction (exact: softmax weights sum to 1; the PyTorch
        # zero-pad logit row has zero weight).  Everything below runs on TB
        # rows instead of TB*N rows.
        wdiff = jnp.sum(diff * dist, axis=1)                       # (TB, H)
        wcat = jnp.sum(cat_t.reshape(TB, N, F + C).astype(jnp.float32) * dist,
                       axis=1)                                     # (TB, F+C)

        # grad term, lane-dense: lane-tile wdiff (c-major), VPU multiply,
        # tiny MXU segment-sum.  (Replaces the old 0/1 "expand" matmul.)
        prod = jnp.tile(wdiff, (1, C)) * field_cm                  # (TB, HC)
        grad = jnp.dot(prod.astype(jnp.bfloat16), seg_ref[...],
                       preferred_element_type=jnp.float32)         # (TB, C_pad)

        # adapt term on the dist-weighted mem row (date columns hit zero rows).
        adapt = jnp.dot(wcat.astype(jnp.bfloat16), adapt_ext_ref[...],
                        preferred_element_type=jnp.float32) + adapt_b_ref[...]

        out_ref[...] = (adapt + grad).astype(out_ref.dtype)        # lane-dense

    def tiled(shape):
        return pl.BlockSpec(shape, lambda i: (i, 0))

    def resident(arr):               # constant index_map -> stays VMEM-resident
        return pl.BlockSpec(arr.shape, lambda i: (0, 0))

    # TODO(synk): on v7x enable core_parallel=True (grid length even, >=2) to
    # shard batch tiles across the two TensorCores.
    sem = pltpu.CORE_PARALLEL if core_parallel else "parallel"

    out = pl.pallas_call(
        kernel,
        out_shape=jax.ShapeDtypeStruct((B_pad, C_pad), jnp.float32),
        grid=(B_pad // TB,),
        in_specs=[
            tiled((TB, F)),                  # date (bf16)
            tiled((TB * N, F + C)),          # [ref_dates | mem] (bf16)
            resident(dfw), resident(dfb), resident(pos_ext),
            resident(adapt_ext), resident(adapt_bp), resident(seg),
        ],
        out_specs=tiled((TB, C_pad)),
        compiler_params=pltpu.CompilerParams(
            dimension_semantics=(sem,),
            vmem_limit_bytes=vmem_limit_bytes),
    )(date_bf, cat_bf, dfw, dfb, pos_ext, adapt_ext, adapt_bp, seg)
    return out[:B, :C]


def mad_forward(idx, date, train_nns, train_dates, mem, params):
    """Glue: one fused neighbor gather (pure indexing), then the Pallas kernel."""
    # TODO(synk): move this gather in-kernel (PrefetchScalarGridSpec refs in
    # SMEM + manual make_async_copy row DMAs) to avoid materializing and
    # re-reading the gathered (B, N, F+C) array in HBM.
    refs = train_nns[idx]                                        # (B, N)
    table = jnp.concatenate([train_dates, mem], axis=1)          # (n_data, F+C)
    cat = table[refs]                                            # (B, N, F+C)
    return mad_pallas(date, cat, params)


def mad_reference(idx, date, train_nns, train_dates, mem, params):
    """Pure-JAX f32 transliteration of the PyTorch forward (incl. zero-padding)."""
    pos_w, pos_b, field_w, field_b, adapt_w, adapt_b = params
    refs = train_nns[idx]
    ref_dates = train_dates[refs]
    mem_refs = mem[refs]

    B, F = date.shape
    H = pos_w.shape[1]
    C = adapt_w.shape[0]

    pos_date = date @ pos_w + pos_b[0]
    pos_refs = ref_dates @ pos_w + pos_b[0]
    diff = pos_date[:, None, :] - pos_refs                       # (B, N, H)
    grad = (date @ field_w + field_b[0]).reshape(B, 1, H, C)     # (B, 1, H, C)
    logits = (mem_refs @ adapt_w + adapt_b[0]
              + (diff[:, :, None, :] @ grad)[:, :, 0, :])        # (B, N, C)
    dist = jax.nn.softmax(-jnp.linalg.norm(diff, axis=-1), axis=-1)
    logits = jnp.concatenate([logits, jnp.zeros((B, 1, C), logits.dtype)], axis=1)
    dist = jnp.concatenate([dist, jnp.zeros((B, 1), dist.dtype)], axis=1)
    return (jnp.swapaxes(logits, 1, 2) @ dist[..., None])[..., 0]


if __name__ == "__main__":
    # Small, deterministic synthetic setup consistent with the module's __init__.
    n_data, n_nn = 64, 8
    B, in_feats, hid_feats, n_classes = 8, 16, 32, 16

    key = jax.random.PRNGKey(0)
    ks = jax.random.split(key, 10)

    train_dates = jax.random.normal(ks[0], (n_data, in_feats), jnp.float32)
    mem = jax.random.normal(ks[1], (n_data, n_classes), jnp.float32)
    train_nns = jax.random.randint(ks[2], (n_data, n_nn), 0, n_data)

    # Parameters (deterministic; JAX convention W:(in,out), y = x @ W + b).
    pos_w = jax.random.normal(ks[3], (in_feats, hid_feats), jnp.float32) * 0.1
    pos_b = jax.random.normal(ks[4], (1, hid_feats), jnp.float32) * 0.1
    field_w = jax.random.normal(ks[5], (in_feats, hid_feats * n_classes),
                                jnp.float32) * 0.1
    field_b = jax.random.normal(ks[6], (1, hid_feats * n_classes),
                                jnp.float32) * 0.1
    adapt_w = jax.random.normal(ks[7], (n_classes, n_classes), jnp.float32) * 0.1
    adapt_b = jax.random.normal(ks[8], (1, n_classes), jnp.float32) * 0.1
    params = (pos_w, pos_b, field_w, field_b, adapt_w, adapt_b)

    # Forward inputs: a batch of training indices and their "date" features.
    idx = jax.random.randint(ks[9], (B,), 0, n_data)
    date = train_dates[idx]

    out = mad_forward(idx, date, train_nns, train_dates, mem, params)
    out = jax.block_until_ready(out)

    ref = mad_reference(idx, date, train_nns, train_dates, mem, params)
    ref = jax.block_until_ready(ref)

    assert out.shape == (B, n_classes)
    # Tolerance covers bf16-input / f32-accumulate matmuls plus the EUP
    # approximate reciprocal in the softmax (estimated abs error << 1e-2).
    np.testing.assert_allclose(np.asarray(out), np.asarray(ref),
                               rtol=2e-2, atol=2e-2)
    print("KERNEL_OK")
</pallas_src>

<mosaic_0001>
module attributes {stable_mosaic.version = 11 : i64} {
  func.func @kernel(%arg0: i32, %arg1: memref<8x16xbf16, #tpu.memory_space<vmem>>, %arg2: memref<64x32xbf16, #tpu.memory_space<vmem>>, %arg3: memref<16x544xbf16, #tpu.memory_space<vmem>>, %arg4: memref<1x512xf32, #tpu.memory_space<vmem>>, %arg5: memref<32x32xbf16, #tpu.memory_space<vmem>>, %arg6: memref<32x128xbf16, #tpu.memory_space<vmem>>, %arg7: memref<1x128xf32, #tpu.memory_space<vmem>>, %arg8: memref<512x128xbf16, #tpu.memory_space<vmem>>, %arg9: memref<8x128xf32, #tpu.memory_space<vmem>>) attributes {dimension_semantics = [#tpu.dimension_semantics<parallel>], iteration_bounds = array<i64: 1>, scalar_prefetch = 0 : i64, scratch_operands = 0 : i64, tpu.core_type = #tpu.core_type<tc>, window_params = [{transform_indices = @transform_0, window_bounds = array<i64: 8, 16>}, {transform_indices = @transform_1, window_bounds = array<i64: 64, 32>}, {pipeline_mode = #tpu.pipeline_mode<synchronous>, transform_indices = @transform_2, window_bounds = array<i64: 16, 544>}, {pipeline_mode = #tpu.pipeline_mode<synchronous>, transform_indices = @transform_3, window_bounds = array<i64: 1, 512>}, {pipeline_mode = #tpu.pipeline_mode<synchronous>, transform_indices = @transform_4, window_bounds = array<i64: 32, 32>}, {pipeline_mode = #tpu.pipeline_mode<synchronous>, transform_indices = @transform_5, window_bounds = array<i64: 32, 128>}, {pipeline_mode = #tpu.pipeline_mode<synchronous>, transform_indices = @transform_6, window_bounds = array<i64: 1, 128>}, {pipeline_mode = #tpu.pipeline_mode<synchronous>, transform_indices = @transform_7, window_bounds = array<i64: 512, 128>}, {transform_indices = @transform_8, window_bounds = array<i64: 8, 128>}]} {
    %c0 = arith.constant 0 : index
    %c0_0 = arith.constant 0 : index
    %0 = vector.load %arg1[%c0, %c0_0] : memref<8x16xbf16, #tpu.memory_space<vmem>>, vector<8x16xbf16>
    %c0_1 = arith.constant 0 : index
    %c0_2 = arith.constant 0 : index
    %1 = vector.load %arg2[%c0_1, %c0_2] : memref<64x32xbf16, #tpu.memory_space<vmem>>, vector<64x32xbf16>
    %c0_3 = arith.constant 0 : index
    %c0_4 = arith.constant 0 : index
    %2 = vector.load %arg3[%c0_3, %c0_4] : memref<16x544xbf16, #tpu.memory_space<vmem>>, vector<16x544xbf16>
    %cst = arith.constant dense<0.000000e+00> : vector<8x544xf32>
    %3 = tpu.matmul %0, %2, %cst {dimension_numbers = #tpu.dot_dimension_numbers<[1], [0], [0], [1], [0, 0, 1, 1], [], []>} : vector<8x16xbf16>, vector<16x544xbf16>, vector<8x544xf32> -> vector<8x544xf32>
    %4 = vector.extract_strided_slice %3 {offsets = [0, 0], sizes = [8, 512], strides = [1, 1]} : vector<8x544xf32> to vector<8x512xf32>
    %c0_5 = arith.constant 0 : index
    %c0_6 = arith.constant 0 : index
    %5 = vector.load %arg4[%c0_5, %c0_6] : memref<1x512xf32, #tpu.memory_space<vmem>>, vector<1x512xf32>
    %6 = vector.broadcast %5 : vector<1x512xf32> to vector<8x512xf32>
    %7 = arith.addf %4, %6 : vector<8x512xf32>
    %8 = vector.extract_strided_slice %3 {offsets = [0, 512], sizes = [8, 32], strides = [1, 1]} : vector<8x544xf32> to vector<8x32xf32>
    %c0_7 = arith.constant 0 : index
    %c0_8 = arith.constant 0 : index
    %9 = vector.load %arg5[%c0_7, %c0_8] : memref<32x32xbf16, #tpu.memory_space<vmem>>, vector<32x32xbf16>
    %cst_9 = arith.constant dense<0.000000e+00> : vector<64x32xf32>
    %10 = tpu.matmul %1, %9, %cst_9 {dimension_numbers = #tpu.dot_dimension_numbers<[1], [0], [0], [1], [0, 0, 1, 1], [], []>} : vector<64x32xbf16>, vector<32x32xbf16>, vector<64x32xf32> -> vector<64x32xf32>
    %11 = vector.shape_cast %8 : vector<8x32xf32> to vector<8x1x32xf32>
    %12 = vector.shape_cast %10 : vector<64x32xf32> to vector<8x8x32xf32>
    %13 = vector.broadcast %11 : vector<8x1x32xf32> to vector<8x8x32xf32>
    %14 = arith.subf %13, %12 : vector<8x8x32xf32>
    %15 = arith.mulf %14, %14 : vector<8x8x32xf32>
    %cst_10 = arith.constant dense<0.000000e+00> : vector<8x8xf32>
    %16 = vector.multi_reduction <add>, %15, %cst_10 [2] : vector<8x8x32xf32> to vector<8x8xf32>
    %17 = math.sqrt %16 : vector<8x8xf32>
    %cst_11 = arith.constant 0.000000e+00 : f32
    %18 = vector.broadcast %cst_11 : f32 to vector<8x8xf32>
    %19 = arith.subf %18, %17 : vector<8x8xf32>
    %cst_12 = arith.constant dense<0xFF800000> : vector<8xf32>
    %20 = vector.multi_reduction <maximumf>, %19, %cst_12 [1] : vector<8x8xf32> to vector<8xf32>
    %21 = vector.shape_cast %20 : vector<8xf32> to vector<8x1xf32>
    %22 = vector.broadcast %21 : vector<8x1xf32> to vector<8x8xf32>
    %23 = arith.subf %19, %22 : vector<8x8xf32>
    %24 = math.exp %23 : vector<8x8xf32>
    %cst_13 = arith.constant dense<0.000000e+00> : vector<8xf32>
    %25 = vector.multi_reduction <add>, %24, %cst_13 [1] : vector<8x8xf32> to vector<8xf32>
    %26 = vector.shape_cast %25 : vector<8xf32> to vector<8x1xf32>
    %27 = tpu.reciprocal %26 {approx = true} : vector<8x1xf32> -> vector<8x1xf32>
    %28 = vector.broadcast %27 : vector<8x1xf32> to vector<8x8xf32>
    %29 = arith.mulf %24, %28 : vector<8x8xf32>
    %30 = vector.shape_cast %29 : vector<8x8xf32> to vector<8x8x1xf32>
    %31 = vector.broadcast %30 : vector<8x8x1xf32> to vector<8x8x32xf32>
    %32 = arith.mulf %14, %31 : vector<8x8x32xf32>
    %cst_14 = arith.constant dense<0.000000e+00> : vector<8x32xf32>
    %33 = vector.multi_reduction <add>, %32, %cst_14 [1] : vector<8x8x32xf32> to vector<8x32xf32>
    %34 = vector.shape_cast %1 : vector<64x32xbf16> to vector<8x8x32xbf16>
    %35 = arith.extf %34 : vector<8x8x32xbf16> to vector<8x8x32xf32>
    %36 = vector.broadcast %30 : vector<8x8x1xf32> to vector<8x8x32xf32>
    %37 = arith.mulf %35, %36 : vector<8x8x32xf32>
    %cst_15 = arith.constant dense<0.000000e+00> : vector<8x32xf32>
    %38 = vector.multi_reduction <add>, %37, %cst_15 [1] : vector<8x8x32xf32> to vector<8x32xf32>
    %39 = tpu.concatenate %33, %33, %33, %33, %33, %33, %33, %33, %33, %33, %33, %33, %33, %33, %33, %33 in 1 : vector<8x32xf32>, vector<8x32xf32>, vector<8x32xf32>, vector<8x32xf32>, vector<8x32xf32>, vector<8x32xf32>, vector<8x32xf32>, vector<8x32xf32>, vector<8x32xf32>, vector<8x32xf32>, vector<8x32xf32>, vector<8x32xf32>, vector<8x32xf32>, vector<8x32xf32>, vector<8x32xf32>, vector<8x32xf32> -> vector<8x512xf32>
    %40 = arith.mulf %39, %7 : vector<8x512xf32>
    %41 = arith.truncf %40 : vector<8x512xf32> to vector<8x512xbf16>
    %c0_16 = arith.constant 0 : index
    %c0_17 = arith.constant 0 : index
    %42 = vector.load %arg8[%c0_16, %c0_17] : memref<512x128xbf16, #tpu.memory_space<vmem>>, vector<512x128xbf16>
    %cst_18 = arith.constant dense<0.000000e+00> : vector<8x128xf32>
    %43 = tpu.matmul %41, %42, %cst_18 {dimension_numbers = #tpu.dot_dimension_numbers<[1], [0], [0], [1], [0, 0, 1, 1], [], []>} : vector<8x512xbf16>, vector<512x128xbf16>, vector<8x128xf32> -> vector<8x128xf32>
    %44 = arith.truncf %38 : vector<8x32xf32> to vector<8x32xbf16>
    %c0_19 = arith.constant 0 : index
    %c0_20 = arith.constant 0 : index
    %45 = vector.load %arg6[%c0_19, %c0_20] : memref<32x128xbf16, #tpu.memory_space<vmem>>, vector<32x128xbf16>
    %cst_21 = arith.constant dense<0.000000e+00> : vector<8x128xf32>
    %46 = tpu.matmul %44, %45, %cst_21 {dimension_numbers = #tpu.dot_dimension_numbers<[1], [0], [0], [1], [0, 0, 1, 1], [], []>} : vector<8x32xbf16>, vector<32x128xbf16>, vector<8x128xf32> -> vector<8x128xf32>
    %c0_22 = arith.constant 0 : index
    %c0_23 = arith.constant 0 : index
    %47 = vector.load %arg7[%c0_22, %c0_23] : memref<1x128xf32, #tpu.memory_space<vmem>>, vector<1x128xf32>
    %48 = vector.broadcast %47 : vector<1x128xf32> to vector<8x128xf32>
    %49 = arith.addf %46, %48 : vector<8x128xf32>
    %50 = arith.addf %49, %43 : vector<8x128xf32>
    %c0_24 = arith.constant 0 : index
    %c0_25 = arith.constant 0 : index
    %51 = vector.load %arg9[%c0_24, %c0_25] : memref<8x128xf32, #tpu.memory_space<vmem>>, vector<8x128xf32>
    tpu.vector_store %arg9[%c0_24, %c0_25], %50 {strides = array<i32>} : memref<8x128xf32, #tpu.memory_space<vmem>>, vector<8x128xf32>,
    return
  }
  func.func @transform_0(%arg0: i32) -> (i32, i32) {
    %c0_i32 = arith.constant 0 : i32
    %c0_i32_0 = arith.constant 0 : i32
    return %arg0, %c0_i32 : i32, i32
  }
  func.func @transform_1(%arg0: i32) -> (i32, i32) {
    %c0_i32 = arith.constant 0 : i32
    %c0_i32_0 = arith.constant 0 : i32
    return %arg0, %c0_i32 : i32, i32
  }
  func.func @transform_2(%arg0: i32) -> (i32, i32) {
    %c0_i32 = arith.constant 0 : i32
    %c0_i32_0 = arith.constant 0 : i32
    %c0_i32_1 = arith.constant 0 : i32
    return %c0_i32, %c0_i32_0 : i32, i32
  }
  func.func @transform_3(%arg0: i32) -> (i32, i32) {
    %c0_i32 = arith.constant 0 : i32
    %c0_i32_0 = arith.constant 0 : i32
    %c0_i32_1 = arith.constant 0 : i32
    return %c0_i32, %c0_i32_0 : i32, i32
  }
  func.func @transform_4(%arg0: i32) -> (i32, i32) {
    %c0_i32 = arith.constant 0 : i32
    %c0_i32_0 = arith.constant 0 : i32
    %c0_i32_1 = arith.constant 0 : i32
    return %c0_i32, %c0_i32_0 : i32, i32
  }
  func.func @transform_5(%arg0: i32) -> (i32, i32) {
    %c0_i32 = arith.constant 0 : i32
    %c0_i32_0 = arith.constant 0 : i32
    %c0_i32_1 = arith.constant 0 : i32
    return %c0_i32, %c0_i32_0 : i32, i32
  }
  func.func @transform_6(%arg0: i32) -> (i32, i32) {
    %c0_i32 = arith.constant 0 : i32
    %c0_i32_0 = arith.constant 0 : i32
    %c0_i32_1 = arith.constant 0 : i32
    return %c0_i32, %c0_i32_0 : i32, i32
  }
  func.func @transform_7(%arg0: i32) -> (i32, i32) {
    %c0_i32 = arith.constant 0 : i32
    %c0_i32_0 = arith.constant 0 : i32
    %c0_i32_1 = arith.constant 0 : i32
    return %c0_i32, %c0_i32_0 : i32, i32
  }
  func.func @transform_8(%arg0: i32) -> (i32, i32) {
    %c0_i32 = arith.constant 0 : i32
    %c0_i32_0 = arith.constant 0 : i32
    return %arg0, %c0_i32 : i32, i32
  }
}

</mosaic_0001>

<bundles_post_ra>
// kernel: tpu_custom_call.1
= control target key start
LH: loop header
LB: loop body
LE: loop exit
PB: predicated region body
PF: predicated region fallthrough
CT: control target
= control target key end

     0   :  { %13 = vsyncpa [#allocation3], 0  ;;  %s2316_s0 = inlined_call_operand.hbm [shape: bf16[8,16], index: 0, kind: input, shape index: {}]   ;;  %s2317_s1 = inlined_call_operand.vmem [shape: bf16[64,32], index: 1, kind: input, shape index: {}]   ;;  %s2318_s2 = inlined_call_operand.vmem [shape: bf16[16,544], index: 2, kind: input, shape index: {}]   ;;  %s2319_s3 = inlined_call_operand.hbm [shape: f32[1,512], index: 3, kind: input, shape index: {}]   ;;  %s2320_s4 = inlined_call_operand.vmem [shape: bf16[32,32], index: 4, kind: input, shape index: {}]   ;;  %s2321_s5 = inlined_call_operand.hbm [shape: bf16[32,128], index: 5, kind: input, shape index: {}]   ;;  %s2322_s6 = inlined_call_operand.vmem [shape: f32[1,128], index: 6, kind: input, shape index: {}]   ;;  %s2323_s7 = inlined_call_operand.hbm [shape: bf16[512,128], index: 7, kind: input, shape index: {}]   ;;  %s2324_s8 = inlined_call_operand.hbm [shape: f32[8,128], index: 8, kind: output, shape index: {}]  }
   0x1   :  { %14 = vsyncpa [#allocation6], 0 }
   0x2   :  { %15 = vsyncpa [#allocation9], 0 }
   0x3   :  { %16 = vsyncpa [#allocation4], 0  ;;  %s1855_s27 = smov [#allocation5]   ;;  %s1856_s29 = smov [#allocation2]  }
   0x4   :  { %s37_s28 = sshll.u32 %s1855_s27, 4  ;;  %s23_s30 = sshll.u32 %s1856_s29, 4  ;;  %s38_s28 = int_to_ptr.vmem [resolvable:$true] %s37_s28  ;;  %s24_s30 = int_to_ptr.vmem [resolvable:$true] %s23_s30 }
   0x5   :  { %s1737_s11 = scalar_lea.hbm %s2319_s3, 64 }
   0x6   :  { %p1738_p0 = scmp.ne.s32.totalorder %s2319_s3, %s1737_s11  ;;  %p1741_p1 = scmp.lt.u32.totalorder %s1737_s11, %s2319_s3 }
   0x8   :  { %p1743_p2 = pnand %p1741_p1, %p1738_p0 }
   0xa   :  { %1746 = shalt.err (!%p1743_p2)
}
   0xb   :  { %s1747_s16 = scalar_lea.vmem %s38_s28, 64  ;;  %p1752_p4 = scmp.lt.s32.totalorder %s38_s28, %s38_s28 }
   0xc   :  { %p1748_p3 = scmp.ne.s32.totalorder %s38_s28, %s1747_s16  ;;  %p1753_p5 = scmp.lt.s32.totalorder %s1747_s16, %s1747_s16 }
   0xe   :  { %p1754_p6 = por %p1753_p5, %p1752_p4 }
  0x10   :  { %p1755_p7 = pnand %p1754_p6, %p1748_p3 }
  0x12   :  { %1758 = shalt.err (!%p1755_p7)
}
  0x13   :  { %40 = dma.hbm_to_vmem [thread:$0]  %s2319_s3, 64, %s38_s28, [#allocation6]  }
  0x14   :  { %s1759_s21 = scalar_lea.hbm %s2316_s0, 64 }
  0x15   :  { %p1760_p8 = scmp.ne.s32.totalorder %s2316_s0, %s1759_s21  ;;  %p1763_p9 = scmp.lt.u32.totalorder %s1759_s21, %s2316_s0 }
  0x17   :  { %p1765_p10 = pnand %p1763_p9, %p1760_p8 }
  0x19   :  { %1768 = shalt.err (!%p1765_p10)
}
  0x1a   :  { %s1769_s26 = scalar_lea.vmem %s24_s30, 64  ;;  %p1774_p12 = scmp.lt.s32.totalorder %s24_s30, %s24_s30 }
  0x1b   :  { %p1770_p11 = scmp.ne.s32.totalorder %s24_s30, %s1769_s26  ;;  %p1775_p13 = scmp.lt.s32.totalorder %s1769_s26, %s1769_s26 }
  0x1d   :  { %p1776_p0 = por %p1775_p13, %p1774_p12 }
  0x1f   :  { %p1777_p1 = pnand %p1776_p0, %p1770_p11 }
  0x21   :  { %1780 = shalt.err (!%p1777_p1)
}
  0x22   :  { %26 = dma.hbm_to_vmem [thread:$0]  %s2316_s0, 64, %s24_s30, [#allocation3]  }
  0x23   :  { %s1857_s28 = smov [#allocation7]   ;;  %s1781_s11 = scalar_lea.hbm %s2321_s5, 256 }
  0x24   :  { %s48_s29 = sshll.u32 %s1857_s28, 4  ;;  %p1782_p2 = scmp.ne.s32.totalorder %s2321_s5, %s1781_s11  ;;  %s49_s29 = int_to_ptr.vmem [resolvable:$true] %s48_s29 }
  0x25   :  { %p1785_p3 = scmp.lt.u32.totalorder %s1781_s11, %s2321_s5 }
  0x27   :  { %p1787_p4 = pnand %p1785_p3, %p1782_p2 }
  0x29   :  { %1790 = shalt.err (!%p1787_p4)
}
  0x2a   :  { %s1791_s16 = scalar_lea.vmem %s49_s29, 256  ;;  %p1796_p6 = scmp.lt.s32.totalorder %s49_s29, %s49_s29 }
  0x2b   :  { %p1792_p5 = scmp.ne.s32.totalorder %s49_s29, %s1791_s16  ;;  %p1797_p7 = scmp.lt.s32.totalorder %s1791_s16, %s1791_s16 }
  0x2d   :  { %p1798_p8 = por %p1797_p7, %p1796_p6 }
  0x2f   :  { %p1799_p9 = pnand %p1798_p8, %p1792_p5 }
  0x31   :  { %1802 = shalt.err (!%p1799_p9)
}
  0x32   :  { %s1858_s0 = smov 64   ;;  %s1859_s30 = smov 4  }
  0x33   :  { %54 = dma.hbm_to_vmem [thread:$0]  %s2321_s5, 256, %s49_s29, [#allocation6], %s1858_s0, %s1858_s0, %s1859_s30  }
  0x34   :  { %s1860_s19 = smov [#allocation8]   ;;  %s1803_s23 = scalar_lea.hbm %s2323_s7, 4096 }
  0x35   :  { %s62_s20 = sshll.u32 %s1860_s19, 4  ;;  %p1804_p10 = scmp.ne.s32.totalorder %s2323_s7, %s1803_s23  ;;  %s63_s20 = int_to_ptr.vmem [resolvable:$true] %s62_s20 }
  0x36   :  { %p1807_p11 = scmp.lt.u32.totalorder %s1803_s23, %s2323_s7 }
  0x38   :  { %p1809_p12 = pnand %p1807_p11, %p1804_p10 }
  0x3a   :  { %1812 = shalt.err (!%p1809_p12)
}
  0x3b   :  { %s1813_s27 = scalar_lea.vmem %s63_s20, 4096  ;;  %p1818_p0 = scmp.lt.s32.totalorder %s63_s20, %s63_s20 }
  0x3c   :  { %p1814_p13 = scmp.ne.s32.totalorder %s63_s20, %s1813_s27  ;;  %p1819_p1 = scmp.lt.s32.totalorder %s1813_s27, %s1813_s27 }
  0x3e   :  { %p1820_p2 = por %p1819_p1, %p1818_p0 }
  0x40   :  { %p1821_p3 = pnand %p1820_p2, %p1814_p13 }
  0x42   :  { %1824 = shalt.err (!%p1821_p3)
}
  0x43   :  { %68 = dma.hbm_to_vmem [thread:$0]  %s2323_s7, 4096, %s63_s20, [#allocation9], %s1858_s0, %s1858_s0, %s1859_s30  }
  0x44   :  { %1847 = dma.done.wait [#allocation3], 64  }
  0x45   :  { %1848 = vsyncadd [#allocation3], 4294967232 }
  0x46   :  { %1849 = dma.done.wait [#allocation6], 320  }
  0x47   :  { %1850 = vsyncadd [#allocation6], 4294966976 }
  0x48   :  { %1851 = dma.done.wait [#allocation9], 4096  }
  0x49   :  { %1852 = vsyncadd [#allocation9], 4294963200  ;;  %v1861_v0 = vmov 0   ;;  %v1651_v1 = vld [vmem:[%s2318_s2 + $0x4] ss:$20 sps:$4 sm:$0xff]   ;;  %vm123_vm0 = vcmask 130048   ;;  %v251_v16 = vlaneseq }
  0x4a   :  { %159 = vmatprep.mubr.bf16.mxu0 %v1861_v0  ;;  %200 = vmatprep.mubr.bf16.mxu1 %v1861_v0  ;;  %v1653_v2 = vld [vmem:[%s2318_s2 + $0xc] ss:$20 sps:$4 sm:$0xff]   ;;  %v1656_v4 = vld [vmem:[%s2318_s2 + $0x8] ss:$20 sps:$4 sm:$0xff]   ;;  %v1658_v7 = vld [vmem:[%s2318_s2 + $0x10] ss:$20 sps:$4 sm:$0xff]  }
  0x4b   :  { %1650 = vset.pattern.permute.xlu0 %v1861_v0  ;;  %1649 = vset.pattern.permute.xlu1 %v1861_v0  ;;  %v1655_v3 = vld [vmem:[%s2318_s2] ss:$20 sps:$4 sm:$0xff]   ;;  %v1862_v8 = vmov 0.0   ;;  %v1659_v9 = vld [vmem:[%s2320_s4 + $0x8] sm:$0xff]   ;;  %vm311_vm1 = vcmask 261120   ;;  %vm1863_vm2 = vmmov 0  }
  0x4c   :  { %127 = vmatprep.subr.bf16.mxu0 %v1651_v1  ;;  %v82_v5 = vld [vmem:[#allocation2] sm:$0xf]  ;;  %168 = vmatprep.subr.bf16.mxu1 %v1653_v2  ;;  %v1995_v11 = vld [vmem:[%s2317_s1 + $0x8] sm:$0xff]   ;;  %v2002_v12 = vld [vmem:[%s2317_s1 + $0x10] sm:$0xff]   ;;  %v1864_v14 = vmov 1966171168  }
  0x4d   :  { %v1657_v6 = vld [vmem:[%s2320_s4] sm:$0xff]   ;;  %128 = vmatpush1.bf16.msra.mxu0 %v1655_v3  ;;  %169 = vmatpush1.bf16.msra.mxu1 %v1656_v4  ;;  %v2011_v13 = vld [vmem:[%s2317_s1 + $0x18] sm:$0xff]   ;;  %v392_v15 = vunpack.c.l.s4 %v1864_v14  ;;  %v2029_v24 = vshrl.u32 %v251_v16, 7  ;;  %vm625_vm7 = vcmask 1041409   ;;  %vm627_vm9 = vcmask 1042434   ;;  %s1865_s26 = smov 32  }
  0x4e   :  { %1610 = vmatprep.subr.bf16.mxu0 %v1862_v8  ;;  %1616 = vmatprep.subr.bf16.mxu1 %v1657_v6  ;;  %v1990_v10 = vld [vmem:[%s2317_s1] sm:$0xff]   ;;  %vm629_vm11 = vcmask 1043459   ;;  %s1866_s3 = smov 96   ;;  %s1867_s28 = smov [#allocation10]  }
  0x4f   :  { %v393_v21 = vunpack.c.0.s8 %v392_v15  ;;  %v2033_v41 = vsub.s32 0, %v2029_v24  ;;  %s1490_s29 = sshll.u32 %s1867_s28, 4  ;;  %s1491_s29 = int_to_ptr.vmem [resolvable:$true] %s1490_s29 }
  0x50   :  { %1506 = vmatmul.mubr.msk.bf16.vlgmr.msra.gmra.mrb[0].mxu0 %vm123_vm0, %v82_v5  ;;  %1507 = vmatmul.mubr.msk.bf16.vlgmr.msra.gmra.mrb[0].mxu1 %vm123_vm0, %v82_v5  ;;  %s1825_s9 = scalar_lea.vmem %s1491_s29, 128  ;;  %p1830_p5 = scmp.lt.s32.totalorder %s1491_s29, %s1491_s29 }
  0x51   :  { %1611 = vmatpush3.bf16.msra.mxu0 %v1658_v7  ;;  %1617 = vmatpush3.bf16.msra.mxu1 %v1657_v6  ;;  %v396_v27 = vsub.s32 %v393_v21, %v2029_v24  ;;  %p1826_p4 = scmp.ne.s32.totalorder %s1491_s29, %s1825_s9  ;;  %p1831_p6 = scmp.lt.s32.totalorder %s1825_s9, %s1825_s9 }
  0x52   :  { %1618 = vmatprep.subr.bf16.mxu1 %v1659_v9  ;;  %1612 = vmatprep.mubr.msk.bf16.mxu0 %vm1863_vm2, %v1862_v8 }
  0x53   :  { %1620 = vmatprep.mubr.msk.bf16.mxu1 %vm311_vm1, %v1990_v10  ;;  %p1832_p7 = por %p1831_p6, %p1830_p5 }
  0x55   :  { %1619 = vmatpush3.bf16.msra.mxu1 %v1659_v9  ;;  %p1833_p8 = pnand %p1832_p7, %p1826_p4 }
  0x58   :  { %1613 = vmatmul.mubr.msk.bf16.vlgmr.msra.gmra.mrb[4].mxu0 %vm123_vm0, %v82_v5  ;;  %1621 = vmatmul.mubr.msk.bf16.vlgmr.msra.gmra.mrb[4].mxu1 %vm311_vm1, %v1995_v11  ;;  %vm631_vm0 = vcmask 1044484  }
  0x59   :  { %1624 = vmatprep.mubr.msk.bf16.mxu1 %vm311_vm1, %v2002_v12 }
  0x60   :  { %1625 = vmatmul.mubr.msk.bf16.gmra.mrb[8].mxu1 %vm311_vm1, %v2011_v13 }
 0x123   :  { %v2020_v17 = vpop.f32.mrb[0].mxu0  ;;  %v2022_v18 = vpop.f32.mrb[0].mxu1 }
 0x124   :  { %v2024_v19 = vpop.f32.mrb[1].mxu0  ;;  %v2026_v20 = vpop.f32.mrb[1].mxu1 }
 0x125   :  { %v165_v22 = vpop.f32.mrb[2].mxu0  ;;  %v206_v23 = vpop.f32.mrb[2].mxu1 }
 0x126   :  { %v166_v25 = vpop.f32.mrb[3].mxu0  ;;  %v207_v26 = vpop.f32.mrb[3].mxu1 }
 0x12b   :  { %v243_v28 = vpop.f32.mrb[4].mxu0  ;;  %v1622_v29 = vpop.f32.mrb[4].mxu1 }
 0x12c   :  { %v390_v30 = vcombine.high %v243_v28, %v243_v28  ;;  %v397_v31 = vrot.slane %v243_v28, %v396_v27  ;;  %v1614_v32 = vpop.f32.mrb[5].mxu0  ;;  %v358_v33 = vpop.f32.mrb[5].mxu1 }
 0x12d   :  { %v246_v34 = vpop.f32.mrb[6].mxu0  ;;  %v1623_v35 = vpop.f32.mrb[6].mxu1 }
 0x12e   :  { %v404_v36 = vrot.slane %v390_v30, %v396_v27  ;;  %v405_v37 = vcombine.high %v397_v31, %v397_v31  ;;  %v413_v38 = vrot.slane %v397_v31, %v396_v27  ;;  %v1615_v39 = vpop.f32.mrb[7].mxu0  ;;  %v361_v40 = vpop.f32.mrb[7].mxu1 }
 0x130   :  { %v406_v42 = vcombine.high %v404_v36, %v404_v36  ;;  %v420_v43 = vrot.slane %v404_v36, %v396_v27  ;;  %v427_v44 = vrot.slane %v405_v37, %v396_v27  ;;  %v435_v45 = vcombine.high %v413_v38, %v413_v38 }
 0x131   :  { %v442_v46 = vrot.slane %v413_v38, %v2033_v41  ;;  %v592_v37 = vand.u32 127, %v251_v16 }
 0x132   :  { %v450_v47 = vrot.slane %v435_v45, %v2033_v41  ;;  %v437_v48 = vcombine.high %v427_v44, %v427_v44  ;;  %v446_v49 = vrot.slane %v427_v44, %v2033_v41  ;;  %v436_v50 = vcombine.high %v420_v43, %v420_v43 }
 0x133   :  { %v2038_v51 = vsub.f32 %v442_v46, %v358_v33  ;;  %v1626_v52 = vpop.f32.mrb[8].mxu1  ;;  %v458_v53 = vrot.slane %v420_v43, %v2033_v41  ;;  %v434_v54 = vrot.slane %v406_v42, %v396_v27  ;;  %v2091_v42 = vsub.s32 %v592_v37, %v2029_v24 }
 0x134   :  { %v2041_v55 = vsub.f32 %v450_v47, %v1622_v29  ;;  %v454_v56 = vrot.slane %v437_v48, %v2033_v41  ;;  %v2044_v57 = vsub.f32 %v446_v49, %v361_v40  ;;  %v466_v58 = vrot.slane %v436_v50, %v2033_v41  ;;  %v374_v59 = vpop.f32.mrb[9].mxu1 }
 0x135   :  { %v2047_v60 = vsub.f32 %v458_v53, %v374_v59  ;;  %v1627_v61 = vpop.f32.mrb[10].mxu1  ;;  %v438_v62 = vcombine.high %v434_v54, %v434_v54  ;;  %v462_v63 = vrot.slane %v434_v54, %v2033_v41  ;;  %v487_v0 = vmul.f32 %v2038_v51, %v2038_v51 }
 0x136   :  { %v2052_v1 = vsub.f32 %v454_v56, %v1623_v35  ;;  %v2054_v2 = vsub.f32 %v466_v58, %v1626_v52  ;;  %v377_v3 = vpop.f32.mrb[11].mxu1  ;;  %v489_v4 = vmul.f32 %v2041_v55, %v2041_v55  ;;  %v488_v9 = vmul.f32 %v2044_v57, %v2044_v57 }
 0x137   :  { %v470_v5 = vrot.slane %v438_v62, %v2033_v41  ;;  %v2059_v6 = vsub.f32 %v462_v63, %v377_v3  ;;  %v495_v7 = vsel %vm311_vm1, %v487_v0, 0.0  ;;  %v491_v23 = vmul.f32 %v2047_v60, %v2047_v60 }
 0x138   :  { %496 = vadd.xlane.f32.xlu0 %v495_v7  ;;  %v501_v14 = vsel %vm311_vm1, %v489_v4, 0.0  ;;  %v490_v15 = vmul.f32 %v2052_v1, %v2052_v1  ;;  %v498_v22 = vsel %vm311_vm1, %v488_v9, 0.0  ;;  %v493_v28 = vmul.f32 %v2054_v2, %v2054_v2 }
 0x139   :  { %v2067_v21 = vsub.f32 %v470_v5, %v1627_v61  ;;  %502 = vadd.xlane.f32.xlu1 %v501_v14  ;;  %v492_v26 = vmul.f32 %v2059_v6, %v2059_v6  ;;  %v507_v27 = vsel %vm311_vm1, %v491_v23, 0.0 }
 0x13a   :  { %v504_v25 = vsel %vm311_vm1, %v490_v15, 0.0  ;;  %v513_v31 = vsel %vm311_vm1, %v493_v28, 0.0 }
 0x13b   :  { %v510_v29 = vsel %vm311_vm1, %v492_v26, 0.0  ;;  %v494_v30 = vmul.f32 %v2067_v21, %v2067_v21 }
 0x13c   :  { %499 = vadd.xlane.f32.xlu0 %v498_v22 }
 0x13d   :  { %505 = vadd.xlane.f32.xlu1 %v504_v25  ;;  %v516_v32 = vsel %vm311_vm1, %v494_v30, 0.0 }
 0x140   :  { %508 = vadd.xlane.f32.xlu0 %v507_v27 }
 0x141   :  { %511 = vadd.xlane.f32.xlu1 %v510_v29 }
 0x144   :  { %514 = vadd.xlane.f32.xlu0 %v513_v31 }
 0x145   :  { %517 = vadd.xlane.f32.xlu1 %v516_v32 }
 0x1c5   :  { %v497_v33 = vpop.xlane.xlu0 %496 }
 0x1c6   :  { %1702 = vrsqrt.f32 %v497_v33  ;;  %v503_v34 = vpop.xlane.xlu1 %502  ;;  %vm521_vm3 = vcmp.eq.f32.partialorder %v497_v33, inf  ;;  %vm523_vm4 = vcmp.eq.f32.partialorder %v497_v33, 0.0  ;;  %v524_v45 = vand.u32 2147483648, %v497_v33 }
 0x1c7   :  { %1704 = vrsqrt.f32 %v503_v34  ;;  %vm535_vm5 = vcmp.eq.f32.partialorder %v503_v34, inf  ;;  %vm537_vm6 = vcmp.eq.f32.partialorder %v503_v34, 0.0  ;;  %v538_v49 = vand.u32 2147483648, %v503_v34 }
 0x1c9   :  { %v500_v35 = vpop.xlane.xlu0 %499 }
 0x1ca   :  { %1706 = vrsqrt.f32 %v500_v35  ;;  %v506_v36 = vpop.xlane.xlu1 %505  ;;  %vm528_vm8 = vcmp.eq.f32.partialorder %v500_v35, inf  ;;  %vm530_vm10 = vcmp.eq.f32.partialorder %v500_v35, 0.0  ;;  %v531_v54 = vand.u32 2147483648, %v500_v35 }
 0x1cb   :  { %1708 = vrsqrt.f32 %v506_v36  ;;  %vm542_vm12 = vcmp.eq.f32.partialorder %v506_v36, inf  ;;  %vm544_vm13 = vcmp.eq.f32.partialorder %v506_v36, 0.0  ;;  %v545_v62 = vand.u32 2147483648, %v506_v36 }
 0x1cd   :  { %v2084_v38 = vpop.xlane.xlu0 %508 }
 0x1ce   :  { %1710 = vrsqrt.f32 %v2084_v38  ;;  %v2087_v39 = vpop.xlane.xlu1 %511  ;;  %vm549_vm14 = vcmp.eq.f32.partialorder %v2084_v38, inf  ;;  %vm551_vm15 = vcmp.eq.f32.partialorder %v2084_v38, 0.0  ;;  %v552_v3 = vand.u32 2147483648, %v2084_v38 }
 0x1cf   :  { %1712 = vrsqrt.f32 %v2087_v39  ;;  %v559_v25 = vand.u32 2147483648, %v2087_v39 }
 0x1d0   :  { %v1703_v40 = vpop.eup %1702 }
 0x1d1   :  { %v1705_v43 = vpop.eup %1704  ;;  %v520_v44 = vmul.f32 %v1703_v40, %v497_v33  ;;  %v2093_v46 = vpop.xlane.xlu0 %514 }
 0x1d2   :  { %v534_v16 = vmul.f32 %v1705_v43, %v503_v34  ;;  %1714 = vrsqrt.f32 %v2093_v46  ;;  %v2096_v47 = vpop.xlane.xlu1 %517  ;;  %v566_v31 = vand.u32 2147483648, %v2093_v46 }
 0x1d3   :  { %v522_v48 = vsel %vm521_vm3, %v497_v33, %v520_v44  ;;  %1716 = vrsqrt.f32 %v2096_v47  ;;  %vm556_vm3 = vcmp.eq.f32.partialorder %v2087_v39, inf }
 0x1d4   :  { %v1707_v50 = vpop.eup %1706  ;;  %v2099_v52 = vsel %vm523_vm4, %v524_v45, %v522_v48  ;;  %v536_v53 = vsel %vm535_vm5, %v503_v34, %v534_v16  ;;  %vm633_vm4 = vcmask 1045509   ;;  %vm558_vm5 = vcmp.eq.f32.partialorder %v2087_v39, 0.0 }
 0x1d5   :  { %v1709_v56 = vpop.eup %1708  ;;  %v2102_v58 = vsel %vm537_vm6, %v538_v49, %v536_v53  ;;  %v527_v59 = vmul.f32 %v1707_v50, %v500_v35  ;;  %v575_v63 = vsub.f32 0.0, %v2099_v52  ;;  %vm563_vm6 = vcmp.eq.f32.partialorder %v2093_v46, inf }
 0x1d6   :  { %v541_v61 = vmul.f32 %v1709_v56, %v506_v36  ;;  %v577_v5 = vsub.f32 0.0, %v2102_v58  ;;  %v573_v50 = vand.u32 2147483648, %v2096_v47 }
 0x1d7   :  { %v529_v0 = vsel %vm528_vm8, %v500_v35, %v527_v59  ;;  %vm565_vm8 = vcmp.eq.f32.partialorder %v2093_v46, 0.0  ;;  %v596_v28 = vrot.slane %v575_v63, %v2091_v42 }
 0x1d8   :  { %v1711_v4 = vpop.eup %1710  ;;  %v2112_v7 = vsel %vm530_vm10, %v531_v54, %v529_v0  ;;  %v543_v9 = vsel %vm542_vm12, %v506_v36, %v541_v61  ;;  %v604_v33 = vrot.slane %v577_v5, %v2091_v42  ;;  %vm570_vm10 = vcmp.eq.f32.partialorder %v2096_v47, inf }
 0x1d9   :  { %v1713_v14 = vpop.eup %1712  ;;  %v576_v15 = vsub.f32 0.0, %v2112_v7  ;;  %v2117_v22 = vsel %vm544_vm13, %v545_v62, %v543_v9  ;;  %v548_v23 = vmul.f32 %v1711_v4, %v2084_v38  ;;  %vm572_vm12 = vcmp.eq.f32.partialorder %v2096_v47, 0.0 }
 0x1da   :  { %v578_v26 = vsub.f32 0.0, %v2117_v22  ;;  %v555_v27 = vmul.f32 %v1713_v14, %v2087_v39  ;;  %vm635_vm13 = vcmask 1046534   ;;  %v2168_v22 = vsub.s32 1, %v2029_v24 }
 0x1db   :  { %v600_v29 = vrot.slane %v576_v15, %v2091_v42  ;;  %v550_v30 = vsel %vm549_vm14, %v2084_v38, %v548_v23  ;;  %vm637_vm14 = vcmask 1047559   ;;  %v2171_v23 = vsub.s32 2, %v2029_v24 }
 0x1dc   :  { %v1715_v32 = vpop.eup %1714  ;;  %v553_v34 = vsel %vm551_vm15, %v552_v3, %v550_v30  ;;  %v557_v35 = vsel %vm556_vm3, %v2087_v39, %v555_v27  ;;  %v608_v36 = vrot.slane %v578_v26, %v2091_v42  ;;  %vm640_vm15 = vcmask 64512  }
 0x1dd   :  { %v1717_v37 = vpop.eup %1716  ;;  %v579_v40 = vsub.f32 0.0, %v553_v34  ;;  %v562_v43 = vmul.f32 %v1715_v32, %v2093_v46  ;;  %v560_v44 = vsel %vm558_vm5, %v559_v25, %v557_v35  ;;  %v626_v45 = vsel %vm625_vm7, %v600_v29, %v596_v28 }
 0x1de   :  { %v569_v16 = vmul.f32 %v1717_v37, %v2096_v47  ;;  %v580_v38 = vsub.f32 0.0, %v560_v44  ;;  %v628_v48 = vsel %vm627_vm9, %v604_v33, %v626_v45  ;;  %v2174_v27 = vsub.s32 3, %v2029_v24 }
 0x1df   :  { %v564_v49 = vsel %vm563_vm6, %v2093_v46, %v562_v43  ;;  %v612_v53 = vrot.slane %v579_v40, %v2091_v42  ;;  %v630_v39 = vsel %vm629_vm11, %v608_v36, %v628_v48  ;;  %v667_v43 = vsub.s32 5, %v2029_v24 }
 0x1e0   :  { %v567_v54 = vsel %vm565_vm8, %v566_v31, %v564_v49  ;;  %v571_v56 = vsel %vm570_vm10, %v2096_v47, %v569_v16  ;;  %v616_v59 = vrot.slane %v580_v38, %v2091_v42  ;;  %v663_v31 = vsub.s32 4, %v2029_v24 }
 0x1e1   :  { %v574_v61 = vsel %vm572_vm12, %v573_v50, %v571_v56  ;;  %v581_v62 = vsub.f32 0.0, %v567_v54  ;;  %v632_v0 = vsel %vm631_vm0, %v612_v53, %v630_v39  ;;  %v671_v48 = vsub.s32 6, %v2029_v24 }
 0x1e2   :  { %v582_v3 = vsub.f32 0.0, %v574_v61  ;;  %v634_v4 = vsel %vm633_vm4, %v616_v59, %v632_v0 }
 0x1e3   :  { %v620_v7 = vrot.slane %v581_v62, %v2091_v42 }
 0x1e4   :  { %v624_v46 = vrot.slane %v582_v3, %v2091_v42 }
 0x1e5   :  { %v636_v9 = vsel %vm635_vm13, %v620_v7, %v634_v4 }
 0x1e6   :  { %v638_v47 = vsel %vm637_vm14, %v624_v46, %v636_v9 }
 0x1e7   :  { %v641_v14 = vsel %vm640_vm15, %v638_v47, -inf }
 0x1e8   :  { %642 = vmax.xlane.f32.xlu0 %v641_v14 }
 0x275   :  { %v643_v25 = vpop.xlane.xlu0 %642 }
 0x276   :  { %v648_v28 = vrot.slane %v643_v25, %v2033_v41  ;;  %v652_v29 = vrot.slane %v643_v25, %v2168_v22  ;;  %v656_v30 = vrot.slane %v643_v25, %v2171_v23  ;;  %v660_v32 = vrot.slane %v643_v25, %v2174_v27 }
 0x277   :  { %v664_v44 = vrot.slane %v643_v25, %v663_v31  ;;  %v668_v52 = vrot.slane %v643_v25, %v667_v43 }
 0x278   :  { %v685_v33 = vsub.f32 %v575_v63, %v648_v28  ;;  %v686_v34 = vsub.f32 %v576_v15, %v652_v29  ;;  %v687_v35 = vsub.f32 %v577_v5, %v656_v30  ;;  %v688_v45 = vsub.f32 %v578_v26, %v660_v32 }
 0x279   :  { %v689_v63 = vsub.f32 %v579_v40, %v664_v44  ;;  %v675_v5 = vsub.s32 7, %v2029_v24  ;;  %v672_v15 = vrot.slane %v643_v25, %v671_v48  ;;  %v690_v49 = vsub.f32 %v580_v38, %v668_v52  ;;  %v1673_v24 = vld [vmem:[#allocation8 + $0xd0] sm:$0xff]  }
 0x27a   :  { %v693_v36 = vmul.f32 1.442695, %v685_v33  ;;  %v695_v37 = vmul.f32 1.442695, %v686_v34  ;;  %v697_v16 = vmul.f32 1.442695, %v687_v35 }
 0x27b   :  { %v699_v58 = vmul.f32 1.442695, %v688_v45  ;;  %v701_v50 = vmul.f32 1.442695, %v689_v63  ;;  %v676_v39 = vrot.slane %v643_v25, %v675_v5  ;;  %v691_v54 = vsub.f32 %v581_v62, %v672_v15 }
 0x27c   :  { %1718 = vpow2.f32 %v693_v36  ;;  %v703_v56 = vmul.f32 1.442695, %v690_v49 }
 0x27d   :  { %1720 = vpow2.f32 %v695_v37  ;;  %v692_v59 = vsub.f32 %v582_v3, %v676_v39  ;;  %v705_v61 = vmul.f32 1.442695, %v691_v54 }
 0x27e   :  { %1722 = vpow2.f32 %v697_v16 }
 0x27f   :  { %1724 = vpow2.f32 %v699_v58  ;;  %v707_v38 = vmul.f32 1.442695, %v692_v59 }
 0x280   :  { %1726 = vpow2.f32 %v701_v50 }
 0x281   :  { %1728 = vpow2.f32 %v703_v56 }
 0x282   :  { %1730 = vpow2.f32 %v705_v61 }
 0x283   :  { %1732 = vpow2.f32 %v707_v38 }
 0x286   :  { %v1719_v26 = vpop.eup %1718 }
 0x287   :  { %v1721_v53 = vpop.eup %1720  ;;  %718 = vperm.xlu1 %1649, %v1719_v26  }
 0x288   :  { %721 = vperm.xlu0 %1650, %v1721_v53   ;;  %v1723_v40 = vpop.eup %1722 }
 0x289   :  { %v1725_v0 = vpop.eup %1724 }
 0x28a   :  { %v1727_v4 = vpop.eup %1726 }
 0x28b   :  { %724 = vperm.xlu1 %1649, %v1723_v40   ;;  %v1729_v7 = vpop.eup %1728 }
 0x28c   :  { %v1731_v46 = vpop.eup %1730 }
 0x28d   :  { %v1733_v62 = vpop.eup %1732 }
 0x28f   :  { %727 = vperm.xlu1 %1649, %v1725_v0  }
 0x293   :  { %730 = vperm.xlu1 %1649, %v1727_v4  }
 0x297   :  { %733 = vperm.xlu1 %1649, %v1729_v7  }
 0x29b   :  { %736 = vperm.xlu1 %1649, %v1731_v46  }
 0x29f   :  { %739 = vperm.xlu1 %1649, %v1733_v62  }
 0x306   :  { %v719_v9 = vpop.permute.xlu1 %718 }
 0x307   :  { %v722_v3 = vpop.permute.xlu0 %721  ;;  %v744_v30 = vrot.slane %v719_v9, %v2091_v42 }
 0x308   :  { %v748_v29 = vrot.slane %v722_v3, %v2091_v42 }
 0x30a   :  { %v725_v47 = vpop.permute.xlu1 %724  ;;  %v773_v36 = vsel %vm625_vm7, %v748_v29, %v744_v30 }
 0x30b   :  { %v752_v32 = vrot.slane %v725_v47, %v2091_v42 }
 0x30d   :  { %v774_v44 = vsel %vm627_vm9, %v752_v32, %v773_v36  ;;  %v1664_v32 = vld [vmem:[#allocation8 + $0x40] sm:$0xff]   ;;  %v1677_v36 = vld [vmem:[#allocation8 + $0xd8] sm:$0xff]  }
 0x30e   :  { %v728_v14 = vpop.permute.xlu1 %727  ;;  %1563 = vmatprep.subr.bf16.mxu0 %v1664_v32 }
 0x30f   :  { %v756_v33 = vrot.slane %v728_v14, %v2091_v42 }
 0x311   :  { %v775_v16 = vsel %vm629_vm11, %v756_v33, %v774_v44  ;;  %v1666_v33 = vld [vmem:[#allocation8] sm:$0xff]   ;;  %v1679_v44 = vld [vmem:[#allocation8 + $0x98] sm:$0xff]  }
 0x312   :  { %v731_v25 = vpop.permute.xlu1 %730  ;;  %1564 = vmatpush3.bf16.msra.mxu0 %v1666_v33 }
 0x313   :  { %v760_v34 = vrot.slane %v731_v25, %v2091_v42 }
 0x315   :  { %v776_v52 = vsel %vm631_vm0, %v760_v34, %v775_v16  ;;  %v1668_v34 = vld [vmem:[#allocation8 + $0x48] sm:$0xff]   ;;  %v1681_v16 = vld [vmem:[#allocation8 + $0xe0] sm:$0xff]  }
 0x316   :  { %v734_v28 = vpop.permute.xlu1 %733  ;;  %1565 = vmatprep.subr.bf16.mxu0 %v1668_v34 }
 0x317   :  { %v764_v37 = vrot.slane %v734_v28, %v2091_v42 }
 0x319   :  { %v777_v58 = vsel %vm633_vm4, %v764_v37, %v776_v52  ;;  %v1678_v37 = vld [vmem:[#allocation8 + $0x18] sm:$0xff]   ;;  %v1682_v52 = vld [vmem:[#allocation8 + $0x20] sm:$0xff]  }
 0x31a   :  { %v737_v35 = vpop.permute.xlu1 %736 }
 0x31b   :  { %v768_v45 = vrot.slane %v737_v35, %v2091_v42  ;;  %v1669_v35 = vld [vmem:[#allocation8 + $0xc8] sm:$0xff]  }
 0x31d   :  { %v778_v49 = vsel %vm635_vm13, %v768_v45, %v777_v58  ;;  %v1680_v45 = vld [vmem:[#allocation8 + $0x60] sm:$0xff]   ;;  %v1684_v58 = vld [vmem:[#allocation8 + $0x68] sm:$0xff]  }
 0x31e   :  { %v740_v63 = vpop.permute.xlu1 %739 }
 0x31f   :  { %v772_v15 = vrot.slane %v740_v63, %v2091_v42  ;;  %v1683_v63 = vld [vmem:[#allocation8 + $0xa0] sm:$0xff]  }
 0x321   :  { %v779_v50 = vsel %vm637_vm14, %v772_v15, %v778_v49  ;;  %v1685_v15 = vld [vmem:[#allocation8 + $0xe8] sm:$0xff]  }
 0x322   :  { %v781_v39 = vsel %vm640_vm15, %v779_v50, 0.0  ;;  %v1686_v49 = vld [vmem:[#allocation8 + $0x28] sm:$0xff]  }
 0x323   :  { %782 = vadd.xlane.f32.xlu1 %v781_v39  ;;  %v1687_v50 = vld [vmem:[#allocation8 + $0xa8] sm:$0xff]   ;;  %v938_v39 = vunpack.c.l.bf16 %v1990_v10 }
 0x3b0   :  { %v783_v54 = vpop.xlane.xlu1 %782 }
 0x3b1   :  { %1734 = vrcp.f32 %v783_v54 }
 0x3bb   :  { %v1735_v56 = vpop.eup %1734 }
 0x3bc   :  { %v789_v59 = vrot.slane %v1735_v56, %v2033_v41  ;;  %v793_v38 = vrot.slane %v1735_v56, %v2168_v22  ;;  %v797_v47 = vrot.slane %v1735_v56, %v2171_v23  ;;  %v801_v14 = vrot.slane %v1735_v56, %v2174_v27 }
 0x3bd   :  { %v805_v3 = vrot.slane %v1735_v56, %v663_v31  ;;  %v1665_v31 = vld [vmem:[#allocation8 + $0xc0] sm:$0xff]  }
 0x3be   :  { %v826_v61 = vmul.f32 %v1719_v26, %v789_v59  ;;  %v827_v9 = vmul.f32 %v1721_v53, %v793_v38  ;;  %v828_v42 = vmul.f32 %v1723_v40, %v797_v47  ;;  %v829_v25 = vmul.f32 %v1725_v0, %v801_v14  ;;  %1585 = vmatprep.subr.bf16.mxu1 %v1665_v31 }
 0x3bf   :  { %v830_v28 = vmul.f32 %v1727_v4, %v805_v3  ;;  %v809_v26 = vrot.slane %v1735_v56, %v667_v43  ;;  %v813_v53 = vrot.slane %v1735_v56, %v671_v48  ;;  %v817_v40 = vrot.slane %v1735_v56, %v675_v5  ;;  %v1667_v4 = vld [vmem:[#allocation8 + $0x80] sm:$0xff]   ;;  %v1670_v43 = vld [vmem:[#allocation8 + $0x8] sm:$0xff]   ;;  %v1674_v5 = vld [vmem:[#allocation8 + $0x10] sm:$0xff]  }
 0x3c0   :  { %836 = vperm.xlu0 %1650, %v826_v61   ;;  %1586 = vmatpush3.bf16.msra.mxu1 %v1667_v4  ;;  %v1671_v48 = vld [vmem:[#allocation8 + $0x88] sm:$0xff]   ;;  %v939_v61 = vunpack.c.h.bf16 %v1990_v10  ;;  %v940_v3 = vunpack.c.l.bf16 %v1995_v11  ;;  %v941_v31 = vunpack.c.h.bf16 %v1995_v11 }
 0x3c1   :  { %v831_v29 = vmul.f32 %v1729_v7, %v809_v26  ;;  %v832_v30 = vmul.f32 %v1731_v46, %v813_v53  ;;  %v833_v0 = vmul.f32 %v1733_v62, %v817_v40  ;;  %1587 = vmatprep.subr.bf16.mxu1 %v1669_v35  ;;  %v1672_v7 = vld [vmem:[#allocation8 + $0x50] sm:$0xff]   ;;  %1566 = vmatpush3.bf16.msra.mxu0 %v1670_v43  ;;  %v1676_v62 = vld [vmem:[#allocation8 + $0x58] sm:$0xff]  }
 0x3c2   :  { %v1675_v46 = vld [vmem:[#allocation8 + $0x90] sm:$0xff]   ;;  %1567 = vmatprep.subr.bf16.mxu0 %v1672_v7 }
 0x3c4   :  { %841 = vperm.xlu0 %1650, %v827_v9   ;;  %1588 = vmatpush3.bf16.msra.mxu1 %v1671_v48 }
 0x3c5   :  { %1589 = vmatprep.subr.bf16.mxu1 %v1673_v24  ;;  %1568 = vmatpush3.bf16.msra.mxu0 %v1674_v5 }
 0x3c6   :  { %1569 = vmatprep.subr.bf16.mxu0 %v1676_v62 }
 0x3c8   :  { %846 = vperm.xlu0 %1650, %v828_v42   ;;  %1590 = vmatpush3.bf16.msra.mxu1 %v1675_v46 }
 0x3c9   :  { %1591 = vmatprep.subr.bf16.mxu1 %v1677_v36  ;;  %1570 = vmatpush3.bf16.msra.mxu0 %v1678_v37 }
 0x3ca   :  { %1571 = vmatprep.subr.bf16.mxu0 %v1680_v45 }
 0x3cc   :  { %851 = vperm.xlu0 %1650, %v829_v25   ;;  %1592 = vmatpush3.bf16.msra.mxu1 %v1679_v44 }
 0x3cd   :  { %1593 = vmatprep.subr.bf16.mxu1 %v1681_v16  ;;  %1572 = vmatpush3.bf16.msra.mxu0 %v1682_v52 }
 0x3ce   :  { %1573 = vmatprep.subr.bf16.mxu0 %v1684_v58  ;;  %v942_v58 = vunpack.c.l.bf16 %v2002_v12 }
 0x3d0   :  { %856 = vperm.xlu0 %1650, %v830_v28   ;;  %1594 = vmatpush3.bf16.msra.mxu1 %v1683_v63 }
 0x3d1   :  { %1595 = vmatprep.subr.bf16.mxu1 %v1685_v15  ;;  %1574 = vmatpush3.bf16.msra.mxu0 %v1686_v49 }
 0x3d4   :  { %861 = vperm.xlu0 %1650, %v831_v29   ;;  %1596 = vmatpush3.bf16.msra.mxu1 %v1687_v50 }
 0x3d8   :  { %866 = vperm.xlu0 %1650, %v832_v30  }
 0x3dc   :  { %871 = vperm.xlu0 %1650, %v833_v0  }
 0x43f   :  { %v837_v54 = vpop.permute.xlu0 %836 }
 0x440   :  { %v874_v56 = vmul.f32 %v837_v54, %v2038_v51  ;;  %v946_v59 = vmul.f32 %v938_v39, %v837_v54 }
 0x442   :  { %v954_v38 = vsel %vm311_vm1, %v946_v59, 0.0  ;;  %v882_v42 = vsel %vm311_vm1, %v874_v56, 0.0 }
 0x443   :  { %v955_v9 = vrot.slane %v954_v38, 4  ;;  %v842_v47 = vpop.permute.xlu0 %841  ;;  %v883_v51 = vrot.slane %v882_v42, 4 }
 0x444   :  { %v875_v14 = vmul.f32 %v842_v47, %v2044_v57  ;;  %v947_v25 = vmul.f32 %v939_v61, %v842_v47  ;;  %v943_v47 = vunpack.c.h.bf16 %v2002_v12 }
 0x445   :  { %v956_v28 = vadd.f32 %v955_v9, %v954_v38  ;;  %v884_v35 = vadd.f32 %v883_v51, %v882_v42 }
 0x446   :  { %v889_v26 = vsel %vm311_vm1, %v875_v14, 0.0  ;;  %v961_v29 = vsel %vm311_vm1, %v947_v25, 0.0 }
 0x447   :  { %v957_v53 = vrot.slane %v956_v28, 2  ;;  %v890_v30 = vrot.slane %v889_v26, 4  ;;  %v962_v10 = vrot.slane %v961_v29, 4  ;;  %v847_v40 = vpop.permute.xlu0 %846  ;;  %v885_v16 = vrot.slane %v884_v35, 2 }
 0x448   :  { %v876_v0 = vmul.f32 %v847_v40, %v2041_v55  ;;  %v948_v32 = vmul.f32 %v940_v3, %v847_v40 }
 0x449   :  { %v958_v33 = vadd.f32 %v957_v53, %v956_v28  ;;  %v963_v57 = vadd.f32 %v962_v10, %v961_v29  ;;  %v891_v48 = vadd.f32 %v890_v30, %v889_v26  ;;  %v2244_v42 = vadd.f32 %v885_v16, %v884_v35 }
 0x44a   :  { %v896_v4 = vsel %vm311_vm1, %v876_v0, 0.0  ;;  %v968_v34 = vsel %vm311_vm1, %v948_v32, 0.0 }
 0x44b   :  { %v959_v43 = vrot.slane %v958_v33, 1  ;;  %v964_v7 = vrot.slane %v963_v57, 2  ;;  %v852_v24 = vpop.permute.xlu0 %851  ;;  %v897_v5 = vrot.slane %v896_v4, 4  ;;  %v969_v46 = vrot.slane %v968_v34, 4 }
 0x44c   :  { %v877_v62 = vmul.f32 %v852_v24, %v2052_v1  ;;  %v949_v36 = vmul.f32 %v941_v31, %v852_v24  ;;  %v892_v52 = vrot.slane %v891_v48, 2  ;;  %v944_v31 = vunpack.c.l.bf16 %v2011_v13 }
 0x44d   :  { %v960_v55 = vadd.f32 %v959_v43, %v958_v33  ;;  %v965_v37 = vadd.f32 %v964_v7, %v963_v57  ;;  %v970_v44 = vadd.f32 %v969_v46, %v968_v34  ;;  %v898_v49 = vadd.f32 %v897_v5, %v896_v4 }
 0x44e   :  { %v903_v11 = vsel %vm311_vm1, %v877_v62, 0.0  ;;  %v975_v45 = vsel %vm311_vm1, %v949_v36, 0.0  ;;  %v2246_v14 = vadd.f32 %v892_v52, %v891_v48  ;;  %v887_v33 = vrot.slane %v2244_v42, 1 }
 0x44f   :  { %v966_v63 = vrot.slane %v965_v37, 1  ;;  %v857_v15 = vpop.permute.xlu0 %856  ;;  %v971_v50 = vrot.slane %v970_v44, 2  ;;  %v976_v39 = vrot.slane %v975_v45, 4  ;;  %v1384_v1 = vpack.c.bf16 %v960_v55, %v960_v55 }
 0x450   :  { %v878_v54 = vmul.f32 %v857_v15, %v2047_v60  ;;  %v904_v59 = vrot.slane %v903_v11, 4  ;;  %v899_v26 = vrot.slane %v898_v49, 2  ;;  %v950_v60 = vmul.f32 %v942_v58, %v857_v15 }
 0x451   :  { %v967_v56 = vadd.f32 %v966_v63, %v965_v37  ;;  %v972_v61 = vadd.f32 %v971_v50, %v970_v44  ;;  %v977_v38 = vadd.f32 %v976_v39, %v975_v45  ;;  %v1411_v53 = vunpack.c.l.b16 %v1384_v1 }
 0x452   :  { %v910_v9 = vsel %vm311_vm1, %v878_v54, 0.0  ;;  %v905_v10 = vadd.f32 %v904_v59, %v903_v11  ;;  %v982_v12 = vsel %vm311_vm1, %v950_v60, 0.0  ;;  %v894_v43 = vrot.slane %v2246_v14, 1 }
 0x453   :  { %v1385_v25 = vpack.c.bf16 %v967_v56, %v967_v56  ;;  %v911_v3 = vrot.slane %v910_v9, 4  ;;  %v862_v28 = vpop.permute.xlu0 %861  ;;  %v973_v29 = vrot.slane %v972_v61, 1  ;;  %v978_v51 = vrot.slane %v977_v38, 2 }
 0x454   :  { %v879_v40 = vmul.f32 %v862_v28, %v2059_v6  ;;  %v983_v34 = vrot.slane %v982_v12, 4  ;;  %v900_v6 = vadd.f32 %v899_v26, %v898_v49  ;;  %v906_v5 = vrot.slane %v905_v10, 2 }
 0x455   :  { %v1412_v30 = vunpack.c.l.b16 %v1385_v25  ;;  %v974_v0 = vadd.f32 %v973_v29, %v972_v61  ;;  %v979_v32 = vadd.f32 %v978_v51, %v977_v38  ;;  %v912_v4 = vadd.f32 %v911_v3, %v910_v9 }
 0x456   :  { %v917_v24 = vsel %vm311_vm1, %v879_v40, 0.0  ;;  %v984_v46 = vadd.f32 %v983_v34, %v982_v12  ;;  %v951_v13 = vmul.f32 %v943_v47, %v862_v28  ;;  %v907_v50 = vadd.f32 %v906_v5, %v905_v10  ;;  %v1689_v12 = vld [vmem:[#allocation8 + $0xf0] sm:$0xff]  }
 0x457   :  { %v1419_v57 = vsel %vm625_vm7, %v1412_v30, %v1411_v53  ;;  %v867_v35 = vpop.permute.xlu0 %866  ;;  %v1386_v48 = vpack.c.bf16 %v974_v0, %v974_v0  ;;  %v980_v7 = vrot.slane %v979_v32, 1  ;;  %v918_v62 = vrot.slane %v917_v24, 4  ;;  %1597 = vmatprep.subr.bf16.mxu1 %v1689_v12  ;;  %v249_v12 = vld [vmem:[#allocation5] sm:$0xf] }
 0x458   :  { %v880_v37 = vmul.f32 %v867_v35, %v2054_v2  ;;  %v913_v44 = vrot.slane %v912_v4, 2  ;;  %v985_v11 = vrot.slane %v984_v46, 2  ;;  %v952_v16 = vmul.f32 %v944_v31, %v867_v35  ;;  %v1691_v35 = vld [vmem:[#allocation8 + $0xb0] sm:$0xff]  }
 0x459   :  { %v1413_v36 = vunpack.c.l.b16 %v1386_v48  ;;  %v981_v55 = vadd.f32 %v980_v7, %v979_v32  ;;  %v919_v45 = vadd.f32 %v918_v62, %v917_v24  ;;  %v989_v15 = vsel %vm311_vm1, %v951_v13, 0.0  ;;  %v1688_v32 = vld [vmem:[#allocation8 + $0x70] sm:$0xff]   ;;  %1598 = vmatpush3.bf16.msra.mxu1 %v1691_v35 }
 0x45a   :  { %v924_v49 = vsel %vm311_vm1, %v880_v37, 0.0  ;;  %v986_v39 = vadd.f32 %v985_v11, %v984_v46  ;;  %v990_v1 = vrot.slane %v989_v15, 4  ;;  %v996_v2 = vsel %vm311_vm1, %v952_v16, 0.0  ;;  %1575 = vmatprep.subr.bf16.mxu0 %v1688_v32 }
 0x45b   :  { %v2256_v52 = vpop.permute.xlu0 %871  ;;  %v1420_v63 = vsel %vm627_vm9, %v1413_v36, %v1419_v57  ;;  %v1387_v58 = vpack.c.bf16 %v981_v55, %v981_v55  ;;  %v920_v54 = vrot.slane %v919_v45, 2  ;;  %v925_v59 = vrot.slane %v924_v49, 4 }
 0x45c   :  { %v881_v61 = vmul.f32 %v2256_v52, %v2067_v21  ;;  %v914_v38 = vadd.f32 %v913_v44, %v912_v4  ;;  %v987_v9 = vrot.slane %v986_v39, 1  ;;  %v991_v47 = vadd.f32 %v990_v1, %v989_v15  ;;  %v1690_v21 = vld [vmem:[#allocation8 + $0x30] sm:$0xff]   ;;  %v1692_v1 = vld [vmem:[#allocation8 + $0x78] sm:$0xff]  }
 0x45d   :  { %v1414_v56 = vunpack.c.l.b16 %v1387_v58  ;;  %v997_v25 = vrot.slane %v996_v2, 4  ;;  %v921_v28 = vadd.f32 %v920_v54, %v919_v45  ;;  %v926_v26 = vadd.f32 %v925_v59, %v924_v49  ;;  %1576 = vmatpush3.bf16.msra.mxu0 %v1690_v21  ;;  %v1695_v59 = vld [vmem:[#allocation8 + $0xb8] sm:$0xff]  }
 0x45e   :  { %v931_v29 = vsel %vm311_vm1, %v881_v61, 0.0  ;;  %v901_v51 = vrot.slane %v900_v6, 1  ;;  %v988_v60 = vadd.f32 %v987_v9, %v986_v39  ;;  %v992_v53 = vrot.slane %v991_v47, 2  ;;  %1577 = vmatprep.subr.bf16.mxu0 %v1692_v1 }
 0x45f   :  { %v1421_v3 = vsel %vm629_vm11, %v1414_v56, %v1420_v63  ;;  %v998_v30 = vadd.f32 %v997_v25, %v996_v2  ;;  %v908_v10 = vrot.slane %v907_v50, 1  ;;  %v927_v40 = vrot.slane %v926_v26, 2  ;;  %v1693_v56 = vld [vmem:[#allocation8 + $0xf8] sm:$0xff]  }
 0x460   :  { %v932_v0 = vrot.slane %v931_v29, 4  ;;  %v915_v31 = vrot.slane %v914_v38, 1  ;;  %v1388_v57 = vpack.c.bf16 %v988_v60, %v988_v60  ;;  %v993_v4 = vadd.f32 %v992_v53, %v991_v47  ;;  %1599 = vmatprep.subr.bf16.mxu1 %v1693_v56 }
 0x461   :  { %v999_v34 = vrot.slane %v998_v30, 2  ;;  %v895_v48 = vadd.f32 %v894_v43, %v2246_v14  ;;  %v922_v7 = vrot.slane %v921_v28, 1  ;;  %v928_v24 = vadd.f32 %v927_v40, %v926_v26  ;;  %1600 = vmatpush3.bf16.msra.mxu1 %v1695_v59 }
 0x462   :  { %v933_v5 = vadd.f32 %v932_v0, %v931_v29  ;;  %v902_v46 = vadd.f32 %v901_v51, %v900_v6  ;;  %v1415_v62 = vunpack.c.l.b16 %v1388_v57  ;;  %v994_v36 = vrot.slane %v993_v4, 1  ;;  %v1736_v51 = vld [vmem:[%s2317_s1 + $0x18] sm:$0xff]  }
 0x463   :  { %v1000_v55 = vadd.f32 %v999_v34, %v998_v30  ;;  %v888_v13 = vadd.f32 %v887_v33, %v2244_v42  ;;  %v909_v37 = vadd.f32 %v908_v10, %v907_v50  ;;  %v929_v44 = vrot.slane %v928_v24, 1  ;;  %v1694_v42 = vld [vmem:[#allocation8 + $0x38] sm:$0xff]  }
 0x464   :  { %v934_v11 = vrot.slane %v933_v5, 2  ;;  %v916_v45 = vadd.f32 %v915_v31, %v914_v38  ;;  %v1422_v14 = vsel %vm631_vm0, %v1415_v62, %v1421_v3  ;;  %v995_v43 = vadd.f32 %v994_v36, %v993_v4  ;;  %1578 = vmatpush3.bf16.msra.mxu0 %v1694_v42 }
 0x465   :  { %v1001_v16 = vrot.slane %v1000_v55, 1  ;;  %v1018_v63 = vsel %vm625_vm7, %v895_v48, %v888_v13  ;;  %v923_v6 = vadd.f32 %v922_v7, %v921_v28  ;;  %v930_v39 = vadd.f32 %v929_v44, %v928_v24  ;;  %1628 = vmatprep.subr.bf16.mxu0 %v1862_v8 }
 0x466   :  { %v935_v58 = vadd.f32 %v934_v11, %v933_v5  ;;  %v1019_v15 = vsel %vm627_vm9, %v902_v46, %v1018_v63  ;;  %v1389_v49 = vpack.c.bf16 %v995_v43, %v995_v43  ;;  %v945_v60 = vunpack.c.h.bf16 %v1736_v51  ;;  %v1696_v43 = vld [vmem:[#allocation7] sm:$0xff]  }
 0x467   :  { %v1002_v54 = vadd.f32 %v1001_v16, %v1000_v55  ;;  %v1020_v50 = vsel %vm629_vm11, %v909_v37, %v1019_v15  ;;  %v254_v31 = vrot.slane %v249_v12, %v2033_v41  ;;  %v258_v57 = vrot.slane %v249_v12, %v2168_v22 }
 0x468   :  { %v936_v33 = vrot.slane %v935_v58, 1  ;;  %v1416_v2 = vunpack.c.l.b16 %v1389_v49  ;;  %v1021_v38 = vsel %vm631_vm0, %v916_v45, %v1020_v50  ;;  %v953_v53 = vmul.f32 %v945_v60, %v2256_v52 }
 0x469   :  { %v1390_v61 = vpack.c.bf16 %v1002_v54, %v1002_v54  ;;  %v1022_v47 = vsel %vm633_vm4, %v923_v6, %v1021_v38  ;;  %v262_v4 = vrot.slane %v249_v12, %v2171_v23  ;;  %v266_v34 = vrot.slane %v249_v12, %v2174_v27 }
 0x46a   :  { %v937_v9 = vadd.f32 %v936_v33, %v935_v58  ;;  %v1423_v25 = vsel %vm633_vm4, %v1416_v2, %v1422_v14  ;;  %v1023_v28 = vsel %vm635_vm13, %v930_v39, %v1022_v47  ;;  %v1003_v30 = vsel %vm311_vm1, %v953_v53, 0.0 }
 0x46b   :  { %v1417_v3 = vunpack.c.l.b16 %v1390_v61  ;;  %v1004_v10 = vrot.slane %v1003_v30, 4  ;;  %vm1036_vm7 = vcmask 523264   ;;  %vm1038_vm9 = vcmask 785408  }
 0x46c   :  { %v1024_v26 = vsel %vm637_vm14, %v937_v9, %v1023_v28  ;;  %v271_v24 = vadd.f32 %v254_v31, %v2020_v17  ;;  %v272_v5 = vadd.f32 %v258_v57, %v2024_v19  ;;  %v273_v46 = vadd.f32 %v262_v4, %v2022_v18  ;;  %v1697_v18 = vld [vmem:[#allocation7 + $0x8] sm:$0xff]  }
 0x46d   :  { %v1424_v29 = vsel %vm635_vm13, %v1417_v3, %v1423_v25  ;;  %1029 = vrot.lane.b32.xlu0 %v1024_v26, %s1858_s0  ;;  %1026 = vrot.lane.b32.xlu1 %v1024_v26, %s1865_s26  ;;  %v1005_v40 = vadd.f32 %v1004_v10, %v1003_v30  ;;  %v274_v41 = vadd.f32 %v266_v34, %v2026_v20 }
 0x46f   :  { %v1006_v0 = vrot.slane %v1005_v40, 2 }
 0x471   :  { %1032 = vrot.lane.b32.xlu0 %v1024_v26, %s1866_s3  ;;  %v1007_v32 = vadd.f32 %v1006_v0, %v1005_v40 }
 0x473   :  { %v1008_v21 = vrot.slane %v1007_v32, 1 }
 0x475   :  { %v1009_v7 = vadd.f32 %v1008_v21, %v1007_v32 }
 0x477   :  { %v1391_v23 = vpack.c.bf16 %v1009_v7, %v1009_v7 }
 0x479   :  { %v1418_v17 = vunpack.c.l.b16 %v1391_v23 }
 0x47b   :  { %v1425_v19 = vsel %vm637_vm14, %v1418_v17, %v1424_v29 }
 0x47c   :  { %v1426_v20 = vpack.c.b16 %v1425_v19, %v1425_v19 }
 0x4df   :  { %v1030_v35 = vpop.permute.xlu0 %1029  ;;  %v1027_v48 = vpop.permute.xlu1 %1026 }
 0x4e0   :  { %v1035_v52 = vsel %vm311_vm1, %v1024_v26, %v1027_v48 }
 0x4e1   :  { %v1037_v62 = vsel %vm1036_vm7, %v1035_v52, %v1030_v35 }
 0x4e3   :  { %v1033_v22 = vpop.permute.xlu0 %1032 }
 0x4e4   :  { %v1039_v36 = vsel %vm1038_vm9, %v1037_v62, %v1033_v22 }
 0x4e5   :  { %v1040_v27 = vmul.f32 %v1039_v36, %v271_v24  ;;  %v1042_v55 = vmul.f32 %v1039_v36, %v273_v46  ;;  %v1041_v13 = vmul.f32 %v1039_v36, %v272_v5  ;;  %v1043_v37 = vmul.f32 %v1039_v36, %v274_v41 }
 0x4e7   :  { %v1044_v44 = vpack.c.bf16 %v1040_v27, %v1040_v27  ;;  %v1046_v11 = vpack.c.bf16 %v1042_v55, %v1042_v55  ;;  %v1045_v45 = vpack.c.bf16 %v1041_v13, %v1041_v13  ;;  %v1047_v14 = vpack.c.bf16 %v1043_v37, %v1043_v37 }
 0x4e9   :  { %1336 = vmatprep.mubr.bf16.mxu0 %v1045_v45  ;;  %1376 = vmatprep.mubr.bf16.mxu1 %v1047_v14 }
 0x4ea   :  { %1337 = vmatmul.mubr.bf16.vlgmr.msra.gmra.mrb[8].mxu0 %v1044_v44  ;;  %1377 = vmatmul.mubr.bf16.vlgmr.msra.gmra.mrb[12].mxu1 %v1046_v11 }
 0x4eb   :  { %1629 = vmatpush3.bf16.msra.mxu0 %v1696_v43  ;;  %1632 = vmatprep.mubr.msk.bf16.mxu0 %vm1863_vm2, %v1862_v8 }
 0x4ec   :  { %1630 = vmatprep.subr.bf16.mxu0 %v1862_v8  ;;  %v1551_v8 = vld [vmem:[%s2322_s6] ss:$0 sm:$0xff] }
 0x4ef   :  { %1631 = vmatpush3.bf16.msra.mxu0 %v1697_v18 }
 0x4f2   :  { %1633 = vmatmul.mubr.msk.bf16.vlgmr.msra.gmra.mrb[12].mxu0 %vm311_vm1, %v1426_v20 }
 0x5bd   :  { %v1579_v16 = vpop.f32.mrb[8].mxu0  ;;  %v1601_v63 = vpop.f32.mrb[12].mxu1 }
 0x5be   :  { %v1580_v6 = vpop.f32.mrb[9].mxu0  ;;  %v1602_v58 = vpop.f32.mrb[13].mxu1 }
 0x5bf   :  { %v1581_v15 = vadd.f32 %v1580_v6, %v1579_v16  ;;  %v1603_v49 = vadd.f32 %v1602_v58, %v1601_v63  ;;  %v1582_v39 = vpop.f32.mrb[10].mxu0  ;;  %v1604_v54 = vpop.f32.mrb[14].mxu1 }
 0x5c0   :  { %v1583_v1 = vpop.f32.mrb[11].mxu0  ;;  %v1605_v56 = vpop.f32.mrb[15].mxu1 }
 0x5c1   :  { %v1379_v42 = vadd.f32 %v1603_v49, %v1581_v15 }
 0x5c5   :  { %v1476_v33 = vpop.f32.mrb[12].mxu0 }
 0x5c6   :  { %v1477_v50 = vadd.f32 %v1551_v8, %v1476_v33  ;;  %v1634_v59 = vpop.f32.mrb[13].mxu0 }
 0x5c7   :  { %v1479_v2 = vpop.f32.mrb[14].mxu0 }
 0x5c8   :  { %v1482_v61 = vadd.f32 %v1477_v50, %v1379_v42  ;;  %v1635_v38 = vpop.f32.mrb[15].mxu0 }
 0x5ca   :  { %1483 = vst [vmem:[#allocation10] sm:$0xff] %v1482_v61 }
 0x5cb   :  { %1836 = shalt.err (!%p1833_p8)
}
 0x5cc   :  { %s1837_s6 = scalar_lea.hbm %s2324_s8, 128 }
 0x5cd   :  { %p1838_p9 = scmp.ne.s32.totalorder %s2324_s8, %s1837_s6  ;;  %p1841_p10 = scmp.lt.u32.totalorder %s1837_s6, %s2324_s8 }
 0x5cf   :  { %p1843_p11 = pnand %p1841_p10, %p1838_p9 }
 0x5d1   :  { %1846 = shalt.err (!%p1843_p11)
}
 0x5d2   :  { %1493 = dma.vmem_to_hbm [thread:$0]  %s1491_s29, 128, %s2324_s8, [#allocation4]  }
 0x5d3   :  { %1853 = dma.done.wait [#allocation4], 128  }
 0x5d4   :  { %1854 = vsyncadd [#allocation4], 4294967168 }
 0x5d5   :  { %1497 = vsyncpa [#allocation3], 1 }
 0x5d6   :  { %1498 = vsyncpa [#allocation6], 1 }
 0x5d7   :  { %1499 = vsyncpa [#allocation9], 1 }
 0x5d8   :  { %1500 = vsyncpa [#allocation4], 1 }

</bundles_post_ra>
